<compile_context>
chip_gen: v7x
topology: tpu7x:2x2x1
jax: 0.10.0
libtpu: 0.0.40
codegen_flags: <defaults>
</compile_context>

<pallas_src>
import jax
import jax.numpy as jnp
from jax import lax
from jax.experimental import pallas as pl
from jax.experimental.pallas import tpu as pltpu


def _round_up(x: int, m: int) -> int:
    return ((x + m - 1) // m) * m


def _vmem_cap_bytes() -> int:
    """Usable VMEM budget for this chip generation (with ~25% headroom)."""
    try:
        cap = int(pltpu.get_tpu_info().vmem_capacity_bytes)
    except Exception:
        cap = 64 << 20  # conservative (v7x per-TC) fallback
    return (cap * 3) // 4


def _make_net_kernel(tc: int, n_chunks: int):
    """Two chained GEMMs + bias adds over one (tm, F_in) batch tile.

    The batch tile is split into `n_chunks` sub-chunks of `tc` rows so the
    f32 intermediate h = x@W1 stays within vreg budget even for large tiles.
    """

    def kernel(x_ref, w1_ref, b1_ref, w2_ref, b2_ref, o_ref):
        if n_chunks == 1:
            h = jnp.dot(x_ref[...], w1_ref[...],
                        preferred_element_type=jnp.float32) + b1_ref[...]
            y = jnp.dot(h, w2_ref[...],
                        preferred_element_type=jnp.float32) + b2_ref[...]
            o_ref[...] = y.astype(o_ref.dtype)
        else:
            def chunk(c, carry):
                r = pl.multiple_of(c * tc, tc)
                xb = x_ref[pl.ds(r, tc), :]
                h = jnp.dot(xb, w1_ref[...],
                            preferred_element_type=jnp.float32) + b1_ref[...]
                y = jnp.dot(h, w2_ref[...],
                            preferred_element_type=jnp.float32) + b2_ref[...]
                o_ref[pl.ds(r, tc), :] = y.astype(o_ref.dtype)
                return carry

            lax.fori_loop(0, n_chunks, chunk, 0, unroll=True)

    return kernel


def prepare_net_params(w1, b1, w2, b2):
    """One-time weight preparation: pad output-feature dim to a lane-dense
    multiple of 128.  Zero padding keeps the math exact (padded h columns are
    exactly 0, padded y columns are exactly 0 and sliced away)."""
    F_in, F_out = w1.shape
    Fo = _round_up(F_out, 128)
    f32 = jnp.float32
    w1_p = jnp.zeros((F_in, Fo), f32).at[:, :F_out].set(w1.astype(f32))
    b1_p = jnp.zeros((1, Fo), f32).at[0, :F_out].set(b1.astype(f32))
    w2_p = jnp.zeros((Fo, Fo), f32).at[:F_out, :F_out].set(w2.astype(f32))
    b2_p = jnp.zeros((1, Fo), f32).at[0, :F_out].set(b2.astype(f32))
    return {"w1": w1_p, "b1": b1_p, "w2": w2_p, "b2": b2_p,
            "f_in": F_in, "f_out": F_out}


def net_forward(x, params):
    """Pallas forward pass. x: (B, F_in). Returns (B, F_out) float32."""
    x = x.astype(jnp.float32)
    B, F_in = x.shape
    assert F_in == params["f_in"], "input feature mismatch"
    F_out = params["f_out"]
    w1_p, b1_p, w2_p, b2_p = params["w1"], params["b1"], params["w2"], params["b2"]
    Fo = w1_p.shape[1]

    vmem_cap = _vmem_cap_bytes()

    # ---- VMEM accounting (bytes) -----------------------------------------
    # Weights/biases: resident across the grid but double-buffered by default.
    weight_bytes = 2 * 4 * (F_in * Fo + Fo * Fo + 2 * Fo)
    # x + out tiles: double-buffered by the Pallas pipeline.
    per_row_bytes = 2 * 4 * (F_in + Fo)

    # ---- batch tile selection --------------------------------------------
    if B <= 128:
        tm = _round_up(max(B, 1), 8)
        tc, n_chunks = tm, 1
    else:
        avail = max(vmem_cap - weight_bytes, 128 * per_row_bytes)
        cap_tm = max(128, min(1024, (avail // per_row_bytes) // 128 * 128))
        tm = int(min(cap_tm, _round_up(B, 128)))
        tc = 128
        n_chunks = tm // tc

    grid = (pl.cdiv(B, tm),)

    needed_vmem = weight_bytes + tm * per_row_bytes + (2 << 20)  # + slack
    vmem_limit = int(min(vmem_cap, max(needed_vmem, 4 << 20)))

    flops = 2 * B * F_in * Fo + 2 * B * Fo * Fo
    bytes_accessed = 4 * (B * F_in + F_in * Fo + Fo * Fo + 2 * Fo + B * Fo)
    cost = pl.CostEstimate(
        flops=flops, transcendentals=0, bytes_accessed=bytes_accessed
    )

    out_p = pl.pallas_call(
        _make_net_kernel(tc, n_chunks),
        out_shape=jax.ShapeDtypeStruct((B, Fo), jnp.float32),
        grid=grid,
        in_specs=[
            pl.BlockSpec((tm, F_in), lambda i: (i, 0)),   # x: tiled over batch
            pl.BlockSpec((F_in, Fo), lambda i: (0, 0)),   # W1: VMEM-resident
            pl.BlockSpec((1, Fo), lambda i: (0, 0)),      # b1: VMEM-resident
            pl.BlockSpec((Fo, Fo), lambda i: (0, 0)),     # W2: VMEM-resident
            pl.BlockSpec((1, Fo), lambda i: (0, 0)),      # b2: VMEM-resident
        ],
        out_specs=pl.BlockSpec((tm, Fo), lambda i: (i, 0)),
        compiler_params=pltpu.CompilerParams(
            dimension_semantics=("parallel",),
            vmem_limit_bytes=vmem_limit,
        ),
        cost_estimate=cost,
    )(x, w1_p, b1_p, w2_p, b2_p)

    # Strip the lane padding back to the logical output width.
    return out_p[:, :F_out]


if __name__ == "__main__":
    # Small shapes consistent with the module's forward.
    batch = 8
    input_features = 32
    output_features = 32

    key = jax.random.PRNGKey(0)
    kx, k1, kb1, k2, kb2 = jax.random.split(key, 5)

    # torch.rand -> uniform [0, 1)
    x = jax.random.uniform(kx, (batch, input_features), dtype=jnp.float32)
    w1 = jax.random.uniform(k1, (input_features, output_features), dtype=jnp.float32)
    b1 = jax.random.uniform(kb1, (output_features,), dtype=jnp.float32)
    w2 = jax.random.uniform(k2, (output_features, output_features), dtype=jnp.float32)
    b2 = jax.random.uniform(kb2, (output_features,), dtype=jnp.float32)

    params = prepare_net_params(w1, b1, w2, b2)   # one-time weight prep
    out = net_forward(x, params)
    out = jax.block_until_ready(out)

    # Pure-JAX reference check
    ref = (x @ w1 + b1) @ w2 + b2
    assert out.shape == (batch, output_features)
    assert jnp.allclose(out, ref, atol=1e-4, rtol=1e-4), "mismatch vs reference"

    print("KERNEL_OK")
</pallas_src>

<mosaic_0001>
module attributes {stable_mosaic.version = 11 : i64} {
  func.func @kernel(%arg0: i32, %arg1: memref<8x32xf32, #tpu.memory_space<vmem>>, %arg2: memref<32x128xf32, #tpu.memory_space<vmem>>, %arg3: memref<1x128xf32, #tpu.memory_space<vmem>>, %arg4: memref<128x128xf32, #tpu.memory_space<vmem>>, %arg5: memref<1x128xf32, #tpu.memory_space<vmem>>, %arg6: memref<8x128xf32, #tpu.memory_space<vmem>>) attributes {dimension_semantics = [#tpu.dimension_semantics<parallel>], iteration_bounds = array<i64: 1>, scalar_prefetch = 0 : i64, scratch_operands = 0 : i64, tpu.core_type = #tpu.core_type<tc>, window_params = [{transform_indices = @transform_0, window_bounds = array<i64: 8, 32>}, {pipeline_mode = #tpu.pipeline_mode<synchronous>, transform_indices = @transform_1, window_bounds = array<i64: 32, 128>}, {pipeline_mode = #tpu.pipeline_mode<synchronous>, transform_indices = @transform_2, window_bounds = array<i64: 1, 128>}, {pipeline_mode = #tpu.pipeline_mode<synchronous>, transform_indices = @transform_3, window_bounds = array<i64: 128, 128>}, {pipeline_mode = #tpu.pipeline_mode<synchronous>, transform_indices = @transform_4, window_bounds = array<i64: 1, 128>}, {transform_indices = @transform_5, window_bounds = array<i64: 8, 128>}]} {
    %c0 = arith.constant 0 : index
    %c0_0 = arith.constant 0 : index
    %0 = vector.load %arg1[%c0, %c0_0] : memref<8x32xf32, #tpu.memory_space<vmem>>, vector<8x32xf32>
    %c0_1 = arith.constant 0 : index
    %c0_2 = arith.constant 0 : index
    %1 = vector.load %arg2[%c0_1, %c0_2] : memref<32x128xf32, #tpu.memory_space<vmem>>, vector<32x128xf32>
    %cst = arith.constant dense<0.000000e+00> : vector<8x128xf32>
    %2 = tpu.matmul %0, %1, %cst {dimension_numbers = #tpu.dot_dimension_numbers<[1], [0], [0], [1], [0, 0, 1, 1], [], []>} : vector<8x32xf32>, vector<32x128xf32>, vector<8x128xf32> -> vector<8x128xf32>
    %c0_3 = arith.constant 0 : index
    %c0_4 = arith.constant 0 : index
    %3 = vector.load %arg3[%c0_3, %c0_4] : memref<1x128xf32, #tpu.memory_space<vmem>>, vector<1x128xf32>
    %4 = vector.broadcast %3 : vector<1x128xf32> to vector<8x128xf32>
    %5 = arith.addf %2, %4 : vector<8x128xf32>
    %c0_5 = arith.constant 0 : index
    %c0_6 = arith.constant 0 : index
    %6 = vector.load %arg4[%c0_5, %c0_6] : memref<128x128xf32, #tpu.memory_space<vmem>>, vector<128x128xf32>
    %cst_7 = arith.constant dense<0.000000e+00> : vector<8x128xf32>
    %7 = tpu.matmul %5, %6, %cst_7 {dimension_numbers = #tpu.dot_dimension_numbers<[1], [0], [0], [1], [0, 0, 1, 1], [], []>} : vector<8x128xf32>, vector<128x128xf32>, vector<8x128xf32> -> vector<8x128xf32>
    %c0_8 = arith.constant 0 : index
    %c0_9 = arith.constant 0 : index
    %8 = vector.load %arg5[%c0_8, %c0_9] : memref<1x128xf32, #tpu.memory_space<vmem>>, vector<1x128xf32>
    %9 = vector.broadcast %8 : vector<1x128xf32> to vector<8x128xf32>
    %10 = arith.addf %7, %9 : vector<8x128xf32>
    %c0_10 = arith.constant 0 : index
    %c0_11 = arith.constant 0 : index
    %11 = vector.load %arg6[%c0_10, %c0_11] : memref<8x128xf32, #tpu.memory_space<vmem>>, vector<8x128xf32>
    tpu.vector_store %arg6[%c0_10, %c0_11], %10 {strides = array<i32>} : memref<8x128xf32, #tpu.memory_space<vmem>>, vector<8x128xf32>,
    return
  }
  func.func @transform_0(%arg0: i32) -> (i32, i32) {
    %c0_i32 = arith.constant 0 : i32
    %c0_i32_0 = arith.constant 0 : i32
    return %arg0, %c0_i32 : i32, i32
  }
  func.func @transform_1(%arg0: i32) -> (i32, i32) {
    %c0_i32 = arith.constant 0 : i32
    %c0_i32_0 = arith.constant 0 : i32
    %c0_i32_1 = arith.constant 0 : i32
    return %c0_i32, %c0_i32_0 : i32, i32
  }
  func.func @transform_2(%arg0: i32) -> (i32, i32) {
    %c0_i32 = arith.constant 0 : i32
    %c0_i32_0 = arith.constant 0 : i32
    %c0_i32_1 = arith.constant 0 : i32
    return %c0_i32, %c0_i32_0 : i32, i32
  }
  func.func @transform_3(%arg0: i32) -> (i32, i32) {
    %c0_i32 = arith.constant 0 : i32
    %c0_i32_0 = arith.constant 0 : i32
    %c0_i32_1 = arith.constant 0 : i32
    return %c0_i32, %c0_i32_0 : i32, i32
  }
  func.func @transform_4(%arg0: i32) -> (i32, i32) {
    %c0_i32 = arith.constant 0 : i32
    %c0_i32_0 = arith.constant 0 : i32
    %c0_i32_1 = arith.constant 0 : i32
    return %c0_i32, %c0_i32_0 : i32, i32
  }
  func.func @transform_5(%arg0: i32) -> (i32, i32) {
    %c0_i32 = arith.constant 0 : i32
    %c0_i32_0 = arith.constant 0 : i32
    return %arg0, %c0_i32 : i32, i32
  }
}

</mosaic_0001>

<bundles_post_ra>
// kernel: tpu_custom_call.1
= control target key start
LH: loop header
LB: loop body
LE: loop exit
PB: predicated region body
PF: predicated region fallthrough
CT: control target
= control target key end

     0   :  { %10 = vsyncpa [#allocation3], 0  ;;  %s559_s0 = inlined_call_operand.hbm [shape: f32[8,32], index: 0, kind: input, shape index: {}]   ;;  %s560_s1 = inlined_call_operand.hbm [shape: f32[32,128], index: 1, kind: input, shape index: {}]   ;;  %s561_s2 = inlined_call_operand.vmem [shape: f32[1,128], index: 2, kind: input, shape index: {}]   ;;  %s562_s3 = inlined_call_operand.hbm [shape: f32[128,128], index: 3, kind: input, shape index: {}]   ;;  %s563_s4 = inlined_call_operand.vmem [shape: f32[1,128], index: 4, kind: input, shape index: {}]   ;;  %s564_s5 = inlined_call_operand.hbm [shape: f32[8,128], index: 5, kind: output, shape index: {}]  }
   0x1   :  { %11 = vsyncpa [#allocation6], 0 }
   0x2   :  { %12 = vsyncpa [#allocation4], 0  ;;  %s460_s18 = smov [#allocation5]   ;;  %s366_s22 = scalar_lea.hbm %s560_s1, 512 }
   0x3   :  { %s28_s19 = sshll.u32 %s460_s18, 4  ;;  %p367_p0 = scmp.ne.s32.totalorder %s560_s1, %s366_s22  ;;  %s29_s19 = int_to_ptr.vmem [resolvable:$true] %s28_s19 }
   0x4   :  { %p370_p1 = scmp.lt.u32.totalorder %s366_s22, %s560_s1 }
   0x6   :  { %p372_p2 = pnand %p370_p1, %p367_p0 }
   0x8   :  { %375 = shalt.err (!%p372_p2)
}
   0x9   :  { %s376_s27 = scalar_lea.vmem %s29_s19, 512  ;;  %p381_p4 = scmp.lt.s32.totalorder %s29_s19, %s29_s19 }
   0xa   :  { %p377_p3 = scmp.ne.s32.totalorder %s29_s19, %s376_s27  ;;  %p382_p5 = scmp.lt.s32.totalorder %s376_s27, %s376_s27 }
   0xc   :  { %p383_p6 = por %p382_p5, %p381_p4 }
   0xe   :  { %p384_p7 = pnand %p383_p6, %p377_p3 }
  0x10   :  { %387 = shalt.err (!%p384_p7)
}
  0x11   :  { %s461_s28 = smov 128   ;;  %s462_s29 = smov 8  }
  0x12   :  { %34 = dma.hbm_to_vmem [thread:$0]  %s560_s1, 512, %s29_s19, [#allocation6], %s461_s28, %s461_s28, %s462_s29  }
  0x13   :  { %s463_s7 = smov [#allocation2]   ;;  %s464_s9 = smov [#allocation7]  }
  0x14   :  { %s19_s8 = sshll.u32 %s463_s7, 4  ;;  %s42_s10 = sshll.u32 %s464_s9, 4  ;;  %s20_s8 = int_to_ptr.vmem [resolvable:$true] %s19_s8  ;;  %s43_s10 = int_to_ptr.vmem [resolvable:$true] %s42_s10 }
  0x15   :  { %s388_s13 = scalar_lea.hbm %s559_s0, 128 }
  0x16   :  { %p389_p8 = scmp.ne.s32.totalorder %s559_s0, %s388_s13  ;;  %p392_p9 = scmp.lt.u32.totalorder %s388_s13, %s559_s0 }
  0x18   :  { %p394_p10 = pnand %p392_p9, %p389_p8 }
  0x1a   :  { %397 = shalt.err (!%p394_p10)
}
  0x1b   :  { %s398_s1 = scalar_lea.vmem %s20_s8, 128  ;;  %p403_p12 = scmp.lt.s32.totalorder %s20_s8, %s20_s8 }
  0x1c   :  { %p399_p11 = scmp.ne.s32.totalorder %s20_s8, %s398_s1  ;;  %p404_p13 = scmp.lt.s32.totalorder %s398_s1, %s398_s1 }
  0x1e   :  { %p405_p0 = por %p404_p13, %p403_p12 }
  0x20   :  { %p406_p1 = pnand %p405_p0, %p399_p11 }
  0x22   :  { %409 = shalt.err (!%p406_p1)
}
  0x23   :  { %22 = dma.hbm_to_vmem [thread:$0]  %s559_s0, 128, %s20_s8, [#allocation3]  }
  0x24   :  { %s410_s22 = scalar_lea.hbm %s562_s3, 2048 }
  0x25   :  { %p411_p2 = scmp.ne.s32.totalorder %s562_s3, %s410_s22  ;;  %p414_p3 = scmp.lt.u32.totalorder %s410_s22, %s562_s3 }
  0x27   :  { %p416_p4 = pnand %p414_p3, %p411_p2 }
  0x29   :  { %419 = shalt.err (!%p416_p4)
}
  0x2a   :  { %s420_s27 = scalar_lea.vmem %s43_s10, 2048  ;;  %p425_p6 = scmp.lt.s32.totalorder %s43_s10, %s43_s10 }
  0x2b   :  { %p421_p5 = scmp.ne.s32.totalorder %s43_s10, %s420_s27  ;;  %p426_p7 = scmp.lt.s32.totalorder %s420_s27, %s420_s27 }
  0x2d   :  { %p427_p8 = por %p426_p7, %p425_p6 }
  0x2f   :  { %p428_p9 = pnand %p427_p8, %p421_p5 }
  0x31   :  { %431 = shalt.err (!%p428_p9)
}
  0x32   :  { %48 = dma.hbm_to_vmem [thread:$0]  %s562_s3, 2048, %s43_s10, [#allocation6], %s461_s28, %s461_s28, %s462_s29  }
  0x33   :  { %454 = dma.done.wait [#allocation3], 128  }
  0x34   :  { %455 = vsyncadd [#allocation3], 4294967168 }
  0x35   :  { %456 = dma.done.wait [#allocation6], 2560  }
  0x36   :  { %457 = vsyncadd [#allocation6], 4294964736  ;;  %v465_v0 = vmov 0.0|0.0   ;;  %vm466_vm0 = vmmov 0   ;;  %v467_v1 = vmov 0.0   ;;  %v61_v2 = vld [vmem:[#allocation5] sm:$0xff] }
  0x37   :  { %327 = vmatprep.subr.bf16.mxu0 %v465_v0  ;;  %289 = vmatprep.mubr.msk.f32.mxu0 %vm466_vm0, %v467_v1  ;;  %v62_v3 = vld [vmem:[#allocation5 + $0x8] sm:$0xff]  ;;  %v63_v4 = vld [vmem:[#allocation5 + $0x10] sm:$0xff]  ;;  %v64_v6 = vld [vmem:[#allocation5 + $0x18] sm:$0xff]  ;;  %vm72_vm1 = vcmask 261120   ;;  %s468_s7 = smov [#allocation8]  }
  0x38   :  { %333 = vmatprep.subr.bf16.mxu1 %v465_v0  ;;  %324 = vmatprep.mubr.msk.f32.mxu1 %vm466_vm0, %v467_v1  ;;  %v328_v5 = vpack.c.bf16 %v62_v3, %v61_v2  ;;  %v146_v7 = vld [vmem:[#allocation7] sm:$0xff]  ;;  %v147_v8 = vld [vmem:[#allocation7 + $0x8] sm:$0xff]  ;;  %v148_v9 = vld [vmem:[#allocation7 + $0x10] sm:$0xff]  ;;  %v331_v11 = vpack.c.bf16 %v64_v6, %v63_v4  ;;  %s246_s8 = sshll.u32 %s468_s7, 4  ;;  %s247_s8 = int_to_ptr.vmem [resolvable:$true] %s246_s8 }
  0x39   :  { %v149_v10 = vld [vmem:[#allocation7 + $0x18] sm:$0xff]  ;;  %v334_v12 = vpack.c.bf16 %v147_v8, %v146_v7  ;;  %v150_v14 = vld [vmem:[#allocation7 + $0x20] sm:$0xff]  ;;  %v151_v15 = vld [vmem:[#allocation7 + $0x28] sm:$0xff]  ;;  %s432_s9 = scalar_lea.vmem %s247_s8, 128  ;;  %p437_p11 = scmp.lt.s32.totalorder %s247_s8, %s247_s8 }
  0x3a   :  { %329 = vmatpush3.bf16.msra.mxu0 %v328_v5  ;;  %v337_v13 = vpack.c.bf16 %v149_v10, %v148_v9  ;;  %v60_v16 = vld [vmem:[#allocation2] sm:$0xff]  ;;  %v340_v17 = vpack.c.bf16 %v151_v15, %v150_v14  ;;  %v152_v18 = vld [vmem:[#allocation7 + $0x30] sm:$0xff]  ;;  %v154_v21 = vld [vmem:[#allocation7 + $0x40] sm:$0xff]  ;;  %p433_p10 = scmp.ne.s32.totalorder %s247_s8, %s432_s9  ;;  %p438_p12 = scmp.lt.s32.totalorder %s432_s9, %s432_s9 }
  0x3b   :  { %330 = vmatprep.subr.bf16.mxu0 %v465_v0  ;;  %335 = vmatpush3.bf16.msra.mxu1 %v334_v12  ;;  %v153_v19 = vld [vmem:[#allocation7 + $0x38] sm:$0xff]  ;;  %v155_v22 = vld [vmem:[#allocation7 + $0x48] sm:$0xff]  ;;  %v156_v24 = vld [vmem:[#allocation7 + $0x50] sm:$0xff] }
  0x3c   :  { %336 = vmatprep.subr.bf16.mxu1 %v465_v0  ;;  %v343_v20 = vpack.c.bf16 %v153_v19, %v152_v18  ;;  %v346_v23 = vpack.c.bf16 %v155_v22, %v154_v21  ;;  %v157_v25 = vld [vmem:[#allocation7 + $0x58] sm:$0xff]  ;;  %v158_v27 = vld [vmem:[#allocation7 + $0x60] sm:$0xff]  ;;  %v159_v28 = vld [vmem:[#allocation7 + $0x68] sm:$0xff]  ;;  %p439_p13 = por %p438_p12, %p437_p11 }
  0x3d   :  { %v349_v26 = vpack.c.bf16 %v157_v25, %v156_v24  ;;  %v352_v29 = vpack.c.bf16 %v159_v28, %v158_v27  ;;  %v160_v30 = vld [vmem:[#allocation7 + $0x70] sm:$0xff]  ;;  %v161_v31 = vld [vmem:[#allocation7 + $0x78] sm:$0xff] }
  0x3e   :  { %332 = vmatpush3.bf16.msra.mxu0 %v331_v11  ;;  %v355_v32 = vpack.c.bf16 %v161_v31, %v160_v30  ;;  %v256_v33 = vld [vmem:[%s561_s2] ss:$0 sm:$0xff]  ;;  %p440_p0 = pnand %p439_p13, %p433_p10 }
  0x3f   :  { %338 = vmatpush3.bf16.msra.mxu1 %v337_v13  ;;  %v258_v37 = vld [vmem:[%s563_s4] ss:$0 sm:$0xff] }
  0x40   :  { %339 = vmatprep.subr.bf16.mxu1 %v465_v0 }
  0x41   :  { %290 = vmatmul.mubr.msk.f32.vlgmr.msra.gmra.mrb[0].mxu0 %vm72_vm1, %v60_v16 }
  0x43   :  { %341 = vmatpush3.bf16.msra.mxu1 %v340_v17 }
  0x44   :  { %342 = vmatprep.subr.bf16.mxu1 %v465_v0 }
  0x47   :  { %344 = vmatpush3.bf16.msra.mxu1 %v343_v20 }
  0x48   :  { %345 = vmatprep.subr.bf16.mxu1 %v465_v0 }
  0x4b   :  { %347 = vmatpush3.bf16.msra.mxu1 %v346_v23 }
  0x4c   :  { %348 = vmatprep.subr.bf16.mxu1 %v465_v0 }
  0x4f   :  { %350 = vmatpush3.bf16.msra.mxu1 %v349_v26 }
  0x50   :  { %351 = vmatprep.subr.bf16.mxu1 %v465_v0 }
  0x53   :  { %353 = vmatpush3.bf16.msra.mxu1 %v352_v29 }
  0x54   :  { %354 = vmatprep.subr.bf16.mxu1 %v465_v0 }
  0x57   :  { %356 = vmatpush3.bf16.msra.mxu1 %v355_v32 }
 0x114   :  { %v142_v34 = vpop.f32.mrb[0].mxu0 }
 0x115   :  { %v143_v35 = vadd.f32 %v256_v33, %v142_v34  ;;  %v291_v36 = vpop.f32.mrb[1].mxu0 }
 0x117   :  { %325 = vmatmul.mubr.f32.vlgmr.msra.gmra.mrb[0].mxu1 %v143_v35 }
 0x1ea   :  { %v235_v38 = vpop.f32.mrb[0].mxu1 }
 0x1eb   :  { %v236_v39 = vadd.f32 %v258_v37, %v235_v38  ;;  %v326_v40 = vpop.f32.mrb[1].mxu1 }
 0x1ed   :  { %239 = vst [vmem:[#allocation8] sm:$0xff] %v236_v39 }
 0x1ee   :  { %443 = shalt.err (!%p440_p0)
}
 0x1ef   :  { %s444_s11 = scalar_lea.hbm %s564_s5, 128 }
 0x1f0   :  { %p445_p1 = scmp.ne.s32.totalorder %s564_s5, %s444_s11  ;;  %p448_p2 = scmp.lt.u32.totalorder %s444_s11, %s564_s5 }
 0x1f2   :  { %p450_p3 = pnand %p448_p2, %p445_p1 }
 0x1f4   :  { %453 = shalt.err (!%p450_p3)
}
 0x1f5   :  { %249 = dma.vmem_to_hbm [thread:$0]  %s247_s8, 128, %s564_s5, [#allocation4]  }
 0x1f6   :  { %458 = dma.done.wait [#allocation4], 128  }
 0x1f7   :  { %459 = vsyncadd [#allocation4], 4294967168 }
 0x1f8   :  { %253 = vsyncpa [#allocation3], 1 }
 0x1f9   :  { %254 = vsyncpa [#allocation6], 1 }
 0x1fa   :  { %255 = vsyncpa [#allocation4], 1 }

</bundles_post_ra>
